<compile_context>
chip_gen: v6e
topology: v6e:2x2x1
jax: 0.10.0
libtpu: 0.0.40
codegen_flags: <defaults>
</compile_context>

<pallas_src>
import jax
import jax.numpy as jnp
from jax.experimental import pallas as pl
from jax.experimental.pallas import tpu as pltpu


def _round_up(n, m):
    return ((n + m - 1) // m) * m


def _pick_batch_tile(B):
    # Tiny batches: single block (launch-dominated regime, tiling can't help).
    if B <= 256:
        return B
    # Otherwise: at least 2 grid steps (so v7x's two TensorCores both get
    # work via the "parallel" axis), tiles a multiple of 8 sublanes, capped at
    # 4096 rows so pipeline buffers + f32 intermediates stay well inside VMEM
    # on every generation (v7x has only 64 MiB physical).
    return min(4096, _round_up(pl.cdiv(B, 2), 8))


def mlp_kernel(x_ref, w1_ref, b1_ref, w2_ref, b2_ref, o_ref):
    x = x_ref[...]            # (TB, F)   F tiny (=2)
    w1 = w1_ref[...]          # (F, H)

    # fc1 on the VPU: contraction K=F is tiny, so an unrolled broadcast
    # mul-add chain beats an MXU push/pop round-trip.
    h = x[:, 0:1] * w1[0:1, :]                    # (TB, H)
    for k in range(1, x.shape[1]):                # static unroll (F is small)
        h = h + x[:, k:k + 1] * w1[k:k + 1, :]
    h = jnp.maximum(h + b1_ref[...], 0.0)         # bias broadcast + ReLU

    # fc2: (TB, H) @ (H, n_out) on the MXU with f32 accumulation. The result
    # is narrow (n_out lanes) so the store writes only the true output bytes.
    y = jnp.dot(h, w2_ref[...], preferred_element_type=jnp.float32)
    o_ref[...] = (y + b2_ref[...]).astype(o_ref.dtype)


def prepare_params(w1, b1, w2, b2):
    """One-time param prep (hoisted out of the per-forward path).

    PyTorch nn.Linear convention in:  w1 (H, F), b1 (H,), w2 (O, H), b2 (O,)
    Out: transposed to (in, out), biases as 2-D rows. No zero padding -> no
    dead bytes DMA'd into the kernel.
    """
    w1_t = jnp.asarray(w1, jnp.float32).T          # (F, H)
    b1_r = jnp.asarray(b1, jnp.float32)[None, :]   # (1, H)
    w2_t = jnp.asarray(w2, jnp.float32).T          # (H, O)
    b2_r = jnp.asarray(b2, jnp.float32)[None, :]   # (1, O)
    return w1_t, b1_r, w2_t, b2_r


@jax.jit
def net_forward(x, w1_t, b1_r, w2_t, b2_r):
    """x: (B, n_features) f32; params from prepare_params. Returns (B, n_out)."""
    B, F = x.shape
    H = w1_t.shape[1]
    O = w2_t.shape[1]

    TB = _pick_batch_tile(B)
    grid = (pl.cdiv(B, TB),)   # ragged last block handled by Pallas

    return pl.pallas_call(
        mlp_kernel,
        out_shape=jax.ShapeDtypeStruct((B, O), jnp.float32),
        grid=grid,
        in_specs=[
            pl.BlockSpec((TB, F), lambda i: (i, 0)),   # streamed over batch
            pl.BlockSpec((F, H), lambda i: (0, 0)),    # weights: resident
            pl.BlockSpec((1, H), lambda i: (0, 0)),
            pl.BlockSpec((H, O), lambda i: (0, 0)),
            pl.BlockSpec((1, O), lambda i: (0, 0)),
        ],
        out_specs=pl.BlockSpec((TB, O), lambda i: (i, 0)),
        compiler_params=pltpu.CompilerParams(
            dimension_semantics=("parallel",),
            vmem_limit_bytes=32 * 1024 * 1024),
    )(x, w1_t, b1_r, w2_t, b2_r)


def _reference(x, w1, b1, w2, b2):
    return jnp.maximum(x @ w1.T + b1, 0.0) @ w2.T + b2


if __name__ == "__main__":
    # Shapes implied by the script: 2-D points in, small hidden, 2-class logits.
    n_features, n_hidden, n_out = 2, 32, 2

    key = jax.random.PRNGKey(0)
    k_x0, k_x1, k_w1, k_b1, k_w2, k_b2, k_big = jax.random.split(key, 7)

    # PyTorch nn.Linear-shaped params: (out, in) / (out,).
    w1 = 0.1 * jax.random.normal(k_w1, (n_hidden, n_features), dtype=jnp.float32)
    b1 = 0.1 * jax.random.normal(k_b1, (n_hidden,), dtype=jnp.float32)
    w2 = 0.1 * jax.random.normal(k_w2, (n_out, n_hidden), dtype=jnp.float32)
    b2 = 0.1 * jax.random.normal(k_b2, (n_out,), dtype=jnp.float32)

    # One-time prep (transpose only), then the jitted fused forward.
    params = prepare_params(w1, b1, w2, b2)

    # --- Small-batch check (two Gaussian clusters, as in the script) --------
    B = 8
    half = B // 2
    x0 = 2.0 + jax.random.normal(k_x0, (half, n_features), dtype=jnp.float32)
    x1 = -2.0 + jax.random.normal(k_x1, (B - half, n_features), dtype=jnp.float32)
    x_small = jnp.concatenate([x0, x1], axis=0)

    out_small = net_forward(x_small, *params)
    jax.block_until_ready(out_small)
    assert out_small.shape == (B, n_out)
    assert jnp.allclose(out_small, _reference(x_small, w1, b1, w2, b2),
                        atol=1e-5, rtol=1e-5)

    # --- Larger batch: exercises the 2-step "parallel" grid / streaming path.
    B_big = 2048
    x_big = jax.random.normal(k_big, (B_big, n_features), dtype=jnp.float32)
    out_big = net_forward(x_big, *params)
    jax.block_until_ready(out_big)
    assert out_big.shape == (B_big, n_out)
    assert jnp.allclose(out_big, _reference(x_big, w1, b1, w2, b2),
                        atol=1e-5, rtol=1e-5)

    print("KERNEL_OK")
</pallas_src>

<mosaic_0001>
module attributes {stable_mosaic.version = 11 : i64} {
  func.func @mlp_kernel(%arg0: i32, %arg1: memref<8x2xf32, #tpu.memory_space<vmem>>, %arg2: memref<2x32xf32, #tpu.memory_space<vmem>>, %arg3: memref<1x32xf32, #tpu.memory_space<vmem>>, %arg4: memref<32x2xf32, #tpu.memory_space<vmem>>, %arg5: memref<1x2xf32, #tpu.memory_space<vmem>>, %arg6: memref<8x2xf32, #tpu.memory_space<vmem>>) attributes {dimension_semantics = [#tpu.dimension_semantics<parallel>], iteration_bounds = array<i64: 1>, scalar_prefetch = 0 : i64, scratch_operands = 0 : i64, tpu.core_type = #tpu.core_type<tc>, window_params = [{transform_indices = @transform_0, window_bounds = array<i64: 8, 2>}, {pipeline_mode = #tpu.pipeline_mode<synchronous>, transform_indices = @transform_1, window_bounds = array<i64: 2, 32>}, {pipeline_mode = #tpu.pipeline_mode<synchronous>, transform_indices = @transform_2, window_bounds = array<i64: 1, 32>}, {pipeline_mode = #tpu.pipeline_mode<synchronous>, transform_indices = @transform_3, window_bounds = array<i64: 32, 2>}, {pipeline_mode = #tpu.pipeline_mode<synchronous>, transform_indices = @transform_4, window_bounds = array<i64: 1, 2>}, {transform_indices = @transform_5, window_bounds = array<i64: 8, 2>}]} {
    %c0 = arith.constant 0 : index
    %c0_0 = arith.constant 0 : index
    %0 = vector.load %arg1[%c0, %c0_0] : memref<8x2xf32, #tpu.memory_space<vmem>>, vector<8x2xf32>
    %c0_1 = arith.constant 0 : index
    %c0_2 = arith.constant 0 : index
    %1 = vector.load %arg2[%c0_1, %c0_2] : memref<2x32xf32, #tpu.memory_space<vmem>>, vector<2x32xf32>
    %2 = vector.extract_strided_slice %0 {offsets = [0, 0], sizes = [8, 1], strides = [1, 1]} : vector<8x2xf32> to vector<8x1xf32>
    %3 = vector.extract_strided_slice %1 {offsets = [0, 0], sizes = [1, 32], strides = [1, 1]} : vector<2x32xf32> to vector<1x32xf32>
    %4 = vector.broadcast %2 : vector<8x1xf32> to vector<8x32xf32>
    %5 = vector.broadcast %3 : vector<1x32xf32> to vector<8x32xf32>
    %6 = arith.mulf %4, %5 : vector<8x32xf32>
    %7 = vector.extract_strided_slice %0 {offsets = [0, 1], sizes = [8, 1], strides = [1, 1]} : vector<8x2xf32> to vector<8x1xf32>
    %8 = vector.extract_strided_slice %1 {offsets = [1, 0], sizes = [1, 32], strides = [1, 1]} : vector<2x32xf32> to vector<1x32xf32>
    %9 = vector.broadcast %7 : vector<8x1xf32> to vector<8x32xf32>
    %10 = vector.broadcast %8 : vector<1x32xf32> to vector<8x32xf32>
    %11 = arith.mulf %9, %10 : vector<8x32xf32>
    %12 = arith.addf %6, %11 : vector<8x32xf32>
    %c0_3 = arith.constant 0 : index
    %c0_4 = arith.constant 0 : index
    %13 = vector.load %arg3[%c0_3, %c0_4] : memref<1x32xf32, #tpu.memory_space<vmem>>, vector<1x32xf32>
    %14 = vector.broadcast %13 : vector<1x32xf32> to vector<8x32xf32>
    %15 = arith.addf %12, %14 : vector<8x32xf32>
    %cst = arith.constant 0.000000e+00 : f32
    %16 = vector.broadcast %cst : f32 to vector<8x32xf32>
    %17 = arith.maximumf %15, %16 : vector<8x32xf32>
    %c0_5 = arith.constant 0 : index
    %c0_6 = arith.constant 0 : index
    %18 = vector.load %arg4[%c0_5, %c0_6] : memref<32x2xf32, #tpu.memory_space<vmem>>, vector<32x2xf32>
    %cst_7 = arith.constant dense<0.000000e+00> : vector<8x2xf32>
    %19 = tpu.matmul %17, %18, %cst_7 {dimension_numbers = #tpu.dot_dimension_numbers<[1], [0], [0], [1], [0, 0, 1, 1], [], []>} : vector<8x32xf32>, vector<32x2xf32>, vector<8x2xf32> -> vector<8x2xf32>
    %c0_8 = arith.constant 0 : index
    %c0_9 = arith.constant 0 : index
    %20 = vector.load %arg5[%c0_8, %c0_9] : memref<1x2xf32, #tpu.memory_space<vmem>>, vector<1x2xf32>
    %21 = vector.broadcast %20 : vector<1x2xf32> to vector<8x2xf32>
    %22 = arith.addf %19, %21 : vector<8x2xf32>
    %c0_10 = arith.constant 0 : index
    %c0_11 = arith.constant 0 : index
    %23 = vector.load %arg6[%c0_10, %c0_11] : memref<8x2xf32, #tpu.memory_space<vmem>>, vector<8x2xf32>
    tpu.vector_store %arg6[%c0_10, %c0_11], %22 {strides = array<i32>} : memref<8x2xf32, #tpu.memory_space<vmem>>, vector<8x2xf32>,
    return
  }
  func.func @transform_0(%arg0: i32) -> (i32, i32) {
    %c0_i32 = arith.constant 0 : i32
    %c0_i32_0 = arith.constant 0 : i32
    return %arg0, %c0_i32 : i32, i32
  }
  func.func @transform_1(%arg0: i32) -> (i32, i32) {
    %c0_i32 = arith.constant 0 : i32
    %c0_i32_0 = arith.constant 0 : i32
    %c0_i32_1 = arith.constant 0 : i32
    return %c0_i32, %c0_i32_0 : i32, i32
  }
  func.func @transform_2(%arg0: i32) -> (i32, i32) {
    %c0_i32 = arith.constant 0 : i32
    %c0_i32_0 = arith.constant 0 : i32
    %c0_i32_1 = arith.constant 0 : i32
    return %c0_i32, %c0_i32_0 : i32, i32
  }
  func.func @transform_3(%arg0: i32) -> (i32, i32) {
    %c0_i32 = arith.constant 0 : i32
    %c0_i32_0 = arith.constant 0 : i32
    %c0_i32_1 = arith.constant 0 : i32
    return %c0_i32, %c0_i32_0 : i32, i32
  }
  func.func @transform_4(%arg0: i32) -> (i32, i32) {
    %c0_i32 = arith.constant 0 : i32
    %c0_i32_0 = arith.constant 0 : i32
    %c0_i32_1 = arith.constant 0 : i32
    return %c0_i32, %c0_i32_0 : i32, i32
  }
  func.func @transform_5(%arg0: i32) -> (i32, i32) {
    %c0_i32 = arith.constant 0 : i32
    %c0_i32_0 = arith.constant 0 : i32
    return %arg0, %c0_i32 : i32, i32
  }
}

</mosaic_0001>

<bundles_post_ra>
// kernel: net_forward.1
= control target key start
LH: loop header
LB: loop body
LE: loop exit
PB: predicated region body
PF: predicated region fallthrough
CT: control target
= control target key end

     0   :  { %v167_v0 = vmov 0   ;;  %v168_v2 = vmov 0.0   ;;  %v169_v5 = vmov 1   ;;  %vm170_vm0 = vmmov 0   ;;  %s228_s0 = inlined_call_operand.vmem [shape: f32[8,2], index: 0, kind: input, shape index: {}]   ;;  %s229_s3 = inlined_call_operand.vmem [shape: f32[32,2], index: 3, kind: input, shape index: {}]   ;;  %s230_s1 = inlined_call_operand.vmem [shape: f32[2,32], index: 1, kind: input, shape index: {}]   ;;  %s231_s2 = inlined_call_operand.vmem [shape: f32[1,32], index: 2, kind: input, shape index: {}]   ;;  %s232_s4 = inlined_call_operand.vmem [shape: f32[1,2], index: 4, kind: input, shape index: {}]   ;;  %s233_s5 = inlined_call_operand.vmem [shape: f32[8,2], index: 5, kind: output, shape index: {}]  }
   0x1   :  { %165 = vset.pattern.permute.xlu0 %v167_v0  ;;  %v20_v1 = vld [vmem:[%s228_s0] sm:$0xff]  ;;  %150 = vmatprep.subr.mxu0 %v168_v2  ;;  %v54_v3 = vld [vmem:[%s229_s3 + $0x18] sm:$0xff]  ;;  %v53_v4 = vld [vmem:[%s229_s3 + $0x10] sm:$0xff]  ;;  %v27_v8 = vlaneseq  ;;  %vm62_vm1 = vcmask 261120   ;;  %vm136_vm2 = vcmask 15360  }
   0x2   :  { %24 = vperm.xlu0 %165, %v20_v1   ;;  %151 = vmatpush3.msra.mxu0 %v54_v3  ;;  %v52_v6 = vld [vmem:[%s229_s3 + $0x8] sm:$0xff]  ;;  %v51_v7 = vld [vmem:[%s229_s3] sm:$0xff] }
   0x3   :  { %152 = vmatprep.subr.mxu0 %v168_v2  ;;  %158 = vmatprep.mubr.msk.f32.mxu0 %vm170_vm0, %v168_v2  ;;  %v28_v9 = vshrl.u32 %v27_v8, 7  ;;  %v21_v12 = vld [vmem:[%s230_s1] sm:$0x3] }
   0x4   :  { %153 = vmatpush3.msra.mxu0 %v53_v4  ;;  %v142_v19 = vld [vmem:[%s231_s2] ss:$0 sm:$0xff] }
   0x5   :  { %154 = vmatprep.subr.mxu0 %v168_v2  ;;  %v29_v10 = vsub.s32 0, %v28_v9  ;;  %v38_v11 = vsub.s32 1, %v28_v9  ;;  %v143_v23 = vld [vmem:[%s232_s4] ss:$0 sm:$0xff] }
   0x6   :  { %166 = vset.pattern.permute.xlu0 %v169_v5  ;;  %155 = vmatpush3.msra.mxu0 %v52_v6 }
   0x7   :  { %33 = vperm.xlu0 %166, %v20_v1   ;;  %156 = vmatprep.subr.mxu0 %v168_v2  ;;  %v30_v14 = vrot.slane %v21_v12, %v29_v10  ;;  %v39_v15 = vrot.slane %v21_v12, %v38_v11 }
   0x8   :  { %157 = vmatpush3.msra.mxu0 %v51_v7 }
  0x7d   :  { %v25_v13 = vpop.permute.xlu0 %24 }
  0x7e   :  { %v31_v17 = vmul.f32 %v30_v14, %v25_v13 }
  0x82   :  { %v34_v16 = vpop.permute.xlu0 %33 }
  0x83   :  { %v40_v18 = vmul.f32 %v39_v15, %v34_v16 }
  0x85   :  { %v41_v20 = vadd.f32 %v40_v18, %v31_v17 }
  0x87   :  { %v49_v21 = vadd.f32 %v142_v19, %v41_v20 }
  0x89   :  { %v50_v22 = vmax.f32 %v49_v21, 0.0 }
  0x8b   :  { %159 = vmatmul.mubr.msk.f32.vlgmr.msra.gmra.mxu0 %vm62_vm1, %v50_v22 }
 0x14b   :  { %v132_v24 = vpop.f32.mrf.mxu0 }
 0x14c   :  { %v133_v25 = vadd.f32 %v143_v23, %v132_v24 }
 0x14d   :  { %v160_v26 = vpop.f32.mrf.mxu0 }
 0x14e   :  { %137 = vst.msk [vmem:[%s233_s5] sm:$0xff] %vm136_vm2, %v133_v25 }

</bundles_post_ra>
